<compile_context>
chip_gen: v7x
topology: tpu7x:2x2x1
jax: 0.10.0
libtpu: 0.0.40
codegen_flags: <defaults>
</compile_context>

<pallas_src>
import jax
import jax.numpy as jnp
from jax.experimental import pallas as pl
from jax.experimental.pallas import tpu as pltpu

HIDDEN = 128
LANE = 128
SUBLANE = 8


def _round_up(x, m):
    return (x + m - 1) // m * m


# ---------------------------------------------------------------------------
# Kernel
# ---------------------------------------------------------------------------
def _dueling_dqn_kernel(
    x_ref,                      # (TILE_B, K8)          input tile (weight dtype)
    w1_ref, b1_ref,             # (K8, 128),  (1, 128)
    w2_ref, b2_ref,             # (128, 128), (1, 128)
    wva_ref, bva_ref,           # (128, 256), (1, 256)   fused value|adv hidden
    wout_ref, bout_ref,         # (256, OUT_PAD), (1, OUT_PAD) fused head
    out_ref,                    # (TILE_B, OUT_PAD)      f32
):
    wdt = w1_ref.dtype
    x = x_ref[...].astype(wdt)   # no-op: input is pre-cast to the weight dtype

    # Feature layer: Linear -> ReLU -> Linear -> ReLU (f32 accumulation).
    h = jnp.dot(x, w1_ref[...], preferred_element_type=jnp.float32) + b1_ref[...]
    h = jnp.maximum(h, 0.0)
    h = jnp.dot(h.astype(wdt), w2_ref[...], preferred_element_type=jnp.float32) + b2_ref[...]
    h = jnp.maximum(h, 0.0)

    # Fused value/advantage hidden layer: one 128x256 MXU matmul.
    hva = jnp.dot(h.astype(wdt), wva_ref[...], preferred_element_type=jnp.float32) + bva_ref[...]
    hva = jnp.maximum(hva, 0.0)

    # Fused head: lanes [0, out) = v + a_j, lane `out` = sum_j a_j, rest = 0.
    out = jnp.dot(hva.astype(wdt), wout_ref[...], preferred_element_type=jnp.float32) + bout_ref[...]
    out_ref[...] = out.astype(out_ref.dtype)


# ---------------------------------------------------------------------------
# Parameter packing (do once, outside the per-step forward)
# ---------------------------------------------------------------------------
def pack_params(params, *, weight_dtype=jnp.bfloat16):
    """Pack raw (in, out)-layout params into the fused kernel layout (do once)."""
    input_dim = params["w1"].shape[0]
    output_dim = params["aw2"].shape[1]
    k8 = _round_up(input_dim, SUBLANE)                  # no 128-lane pad needed
    out_pad = _round_up(output_dim + 1, LANE)           # +1 lane for adv row-sum

    # Input layer; pad contraction dim only up to the 8-sublane multiple.
    w1 = params["w1"]
    if k8 != input_dim:
        w1 = jnp.zeros((k8, HIDDEN), jnp.float32).at[:input_dim].set(w1)

    # Fused stream-hidden layer: cols [0,128) = value, [128,256) = advantage.
    w_va = jnp.concatenate([params["vw1"], params["aw1"]], axis=1)      # (128, 256)
    b_va = jnp.concatenate([params["vb1"], params["ab1"]], axis=1)      # (1, 256)

    # Fused, lane-dense head (256, OUT_PAD):
    #   rows [0,128)    : value weight broadcast into every real q column
    #   rows [128,256)  : advantage weight into real q columns
    #   column `output_dim`: per-row advantage sum (for the global mean)
    # The sum lane is built from the weight-dtype-rounded aw2 so it stays
    # consistent with what the real columns compute under bf16 packing.
    aw2_r = params["aw2"].astype(weight_dtype).astype(jnp.float32)
    w_out = jnp.zeros((2 * HIDDEN, out_pad), jnp.float32)
    w_out = w_out.at[:HIDDEN, :output_dim].set(
        jnp.broadcast_to(params["vw2"], (HIDDEN, output_dim)))
    w_out = w_out.at[HIDDEN:, :output_dim].set(params["aw2"])
    w_out = w_out.at[HIDDEN:, output_dim].set(jnp.sum(aw2_r, axis=1))

    b_out = jnp.zeros((1, out_pad), jnp.float32)
    b_out = b_out.at[0, :output_dim].set(params["vb2"][0, 0] + params["ab2"][0])
    b_out = b_out.at[0, output_dim].set(jnp.sum(params["ab2"]))

    cast = lambda w: w.astype(weight_dtype)
    return dict(
        input_dim=input_dim, output_dim=output_dim,
        w1=cast(w1), b1=params["b1"].astype(jnp.float32),
        w2=cast(params["w2"]), b2=params["b2"].astype(jnp.float32),
        w_va=cast(w_va), b_va=b_va.astype(jnp.float32),
        w_out=cast(w_out), b_out=b_out.astype(jnp.float32),
    )


# ---------------------------------------------------------------------------
# Forward wrapper
# ---------------------------------------------------------------------------
def dueling_dqn_forward(state, packed, *, tile_b=2048):
    """state: (B, input_dim); packed: output of pack_params."""
    B, input_dim = state.shape
    assert input_dim == packed["input_dim"]
    output_dim = packed["output_dim"]
    k8 = packed["w1"].shape[0]
    out_pad = packed["w_out"].shape[1]
    in_dtype = packed["w1"].dtype

    # Batch tile: multiple of 8 sublanes; 2048 cap keeps live tiles (bf16 in,
    # f32 out, double-buffered, plus intermediates) at ~10-12 MiB — well inside
    # the 32 MiB limit below and v7x's 64 MiB physical VMEM.
    tile_b = min(tile_b, 2048)
    tile_b = min(tile_b, _round_up(B, SUBLANE))
    if B > 2 * SUBLANE:
        # Ensure >= 2 parallel grid steps so v7x's two TensorCores both get work.
        tile_b = min(tile_b, _round_up(-(-B // 2), SUBLANE))
    tile_b = _round_up(max(tile_b, SUBLANE), SUBLANE)
    b_pad = _round_up(B, tile_b)

    # Cast to the kernel's streaming dtype; pad only when actually required
    # (cast + pad fuse into the single copy XLA already has to make).
    x = state.astype(in_dtype)
    if b_pad != B or k8 != input_dim:
        x = jnp.pad(x, ((0, b_pad - B), (0, k8 - input_dim)))

    const = lambda i: (0, 0)
    raw = pl.pallas_call(
        _dueling_dqn_kernel,
        out_shape=jax.ShapeDtypeStruct((b_pad, out_pad), jnp.float32),
        grid_spec=pltpu.PrefetchScalarGridSpec(
            num_scalar_prefetch=0,
            grid=(b_pad // tile_b,),
            in_specs=[
                pl.BlockSpec((tile_b, k8), lambda i: (i, 0)),       # state tile
                pl.BlockSpec((k8, HIDDEN), const),                  # w1 (resident)
                pl.BlockSpec((1, HIDDEN), const),                   # b1
                pl.BlockSpec((HIDDEN, HIDDEN), const),              # w2
                pl.BlockSpec((1, HIDDEN), const),                   # b2
                pl.BlockSpec((HIDDEN, 2 * HIDDEN), const),          # w_va (fused)
                pl.BlockSpec((1, 2 * HIDDEN), const),               # b_va
                pl.BlockSpec((2 * HIDDEN, out_pad), const),         # w_out (fused head)
                pl.BlockSpec((1, out_pad), const),                  # b_out
            ],
            out_specs=pl.BlockSpec((tile_b, out_pad), lambda i: (i, 0)),
        ),
        compiler_params=pltpu.CompilerParams(
            dimension_semantics=("parallel",),          # independent batch tiles
            vmem_limit_bytes=32 * 1024 * 1024,          # <= v7x 64 MiB physical
        ),
    )(x, packed["w1"], packed["b1"], packed["w2"], packed["b2"],
      packed["w_va"], packed["b_va"], packed["w_out"], packed["b_out"])

    if b_pad != B:
        raw = raw[:B]
    q_plus_v = raw[:, :output_dim]                       # = values + advantages
    # Global scalar advantage mean (matches `advantages.mean()` in the module);
    # applied as a trivial f32 XLA subtract so batch tiles stay independent.
    a_mean = jnp.sum(raw[:, output_dim]) / (B * output_dim)
    return q_plus_v - a_mean


# ---------------------------------------------------------------------------
# Synthetic init + pure-JAX reference
# ---------------------------------------------------------------------------
def init_params(key, input_dim, output_dim):
    def linear(key, fan_in, fan_out):
        kw, kb = jax.random.split(key)
        bound = 1.0 / jnp.sqrt(jnp.float32(fan_in))
        w = jax.random.uniform(kw, (fan_in, fan_out), jnp.float32, -bound, bound)
        b = jax.random.uniform(kb, (1, fan_out), jnp.float32, -bound, bound)
        return w, b

    keys = jax.random.split(key, 6)
    w1, b1 = linear(keys[0], input_dim, HIDDEN)
    w2, b2 = linear(keys[1], HIDDEN, HIDDEN)
    vw1, vb1 = linear(keys[2], HIDDEN, HIDDEN)
    vw2, vb2 = linear(keys[3], HIDDEN, 1)
    aw1, ab1 = linear(keys[4], HIDDEN, HIDDEN)
    aw2, ab2 = linear(keys[5], HIDDEN, output_dim)
    return dict(w1=w1, b1=b1, w2=w2, b2=b2,
                vw1=vw1, vb1=vb1, vw2=vw2, vb2=vb2,
                aw1=aw1, ab1=ab1, aw2=aw2, ab2=ab2)


def reference_forward(state, p):
    h = jnp.maximum(state @ p["w1"] + p["b1"], 0.0)
    h = jnp.maximum(h @ p["w2"] + p["b2"], 0.0)
    v = jnp.maximum(h @ p["vw1"] + p["vb1"], 0.0) @ p["vw2"] + p["vb2"]
    a = jnp.maximum(h @ p["aw1"] + p["ab1"], 0.0) @ p["aw2"] + p["ab2"]
    return v + (a - jnp.mean(a))


if __name__ == "__main__":
    key = jax.random.PRNGKey(0)
    k_state, k_params, k_big = jax.random.split(key, 3)

    input_dim, output_dim = 16, 8
    params = init_params(k_params, input_dim, output_dim)

    packed_f32 = pack_params(params, weight_dtype=jnp.float32)   # exact-math check
    packed_bf16 = pack_params(params)                            # default: bf16 streams

    # Small-batch check (B=2, matches the original test shapes).
    state = jax.random.normal(k_state, (2, input_dim), dtype=jnp.float32)
    ref = reference_forward(state, params)

    q = jax.block_until_ready(dueling_dqn_forward(state, packed_f32))
    assert q.shape == (2, output_dim)
    assert jnp.allclose(q, ref, atol=1e-4, rtol=1e-4), (
        f"mismatch (small, f32): max abs err = {float(jnp.max(jnp.abs(q - ref)))}"
    )

    q_bf = jax.block_until_ready(dueling_dqn_forward(state, packed_bf16))
    assert jnp.allclose(q_bf, ref, atol=5e-2, rtol=5e-2), (
        f"mismatch (small, bf16): max abs err = {float(jnp.max(jnp.abs(q_bf - ref)))}"
    )

    # Larger batch exercising the batch grid (>= 2 parallel tiles + padded tail).
    state_big = jax.random.normal(k_big, (300, input_dim), dtype=jnp.float32)
    ref_big = reference_forward(state_big, params)

    q_big = jax.block_until_ready(dueling_dqn_forward(state_big, packed_f32))
    assert q_big.shape == (300, output_dim)
    assert jnp.allclose(q_big, ref_big, atol=1e-4, rtol=1e-4), (
        f"mismatch (big, f32): max abs err = {float(jnp.max(jnp.abs(q_big - ref_big)))}"
    )

    q_big_bf = jax.block_until_ready(dueling_dqn_forward(state_big, packed_bf16))
    assert jnp.allclose(q_big_bf, ref_big, atol=5e-2, rtol=5e-2), (
        f"mismatch (big, bf16): max abs err = {float(jnp.max(jnp.abs(q_big_bf - ref_big)))}"
    )

    print("KERNEL_OK")
</pallas_src>

<mosaic_0001>
module attributes {stable_mosaic.version = 11 : i64} {
  func.func @_dueling_dqn_kernel(%arg0: i32, %arg1: memref<8x16xf32, #tpu.memory_space<vmem>>, %arg2: memref<16x128xf32, #tpu.memory_space<vmem>>, %arg3: memref<1x128xf32, #tpu.memory_space<vmem>>, %arg4: memref<128x128xf32, #tpu.memory_space<vmem>>, %arg5: memref<1x128xf32, #tpu.memory_space<vmem>>, %arg6: memref<128x256xf32, #tpu.memory_space<vmem>>, %arg7: memref<1x256xf32, #tpu.memory_space<vmem>>, %arg8: memref<256x128xf32, #tpu.memory_space<vmem>>, %arg9: memref<1x128xf32, #tpu.memory_space<vmem>>, %arg10: memref<8x128xf32, #tpu.memory_space<vmem>>) attributes {dimension_semantics = [#tpu.dimension_semantics<parallel>], iteration_bounds = array<i64: 1>, scalar_prefetch = 0 : i64, scratch_operands = 0 : i64, tpu.core_type = #tpu.core_type<tc>, window_params = [{transform_indices = @transform_0, window_bounds = array<i64: 8, 16>}, {pipeline_mode = #tpu.pipeline_mode<synchronous>, transform_indices = @transform_1, window_bounds = array<i64: 16, 128>}, {pipeline_mode = #tpu.pipeline_mode<synchronous>, transform_indices = @transform_2, window_bounds = array<i64: 1, 128>}, {pipeline_mode = #tpu.pipeline_mode<synchronous>, transform_indices = @transform_3, window_bounds = array<i64: 128, 128>}, {pipeline_mode = #tpu.pipeline_mode<synchronous>, transform_indices = @transform_4, window_bounds = array<i64: 1, 128>}, {pipeline_mode = #tpu.pipeline_mode<synchronous>, transform_indices = @transform_5, window_bounds = array<i64: 128, 256>}, {pipeline_mode = #tpu.pipeline_mode<synchronous>, transform_indices = @transform_6, window_bounds = array<i64: 1, 256>}, {pipeline_mode = #tpu.pipeline_mode<synchronous>, transform_indices = @transform_7, window_bounds = array<i64: 256, 128>}, {pipeline_mode = #tpu.pipeline_mode<synchronous>, transform_indices = @transform_8, window_bounds = array<i64: 1, 128>}, {transform_indices = @transform_9, window_bounds = array<i64: 8, 128>}]} {
    %c0 = arith.constant 0 : index
    %c0_0 = arith.constant 0 : index
    %0 = vector.load %arg1[%c0, %c0_0] : memref<8x16xf32, #tpu.memory_space<vmem>>, vector<8x16xf32>
    %c0_1 = arith.constant 0 : index
    %c0_2 = arith.constant 0 : index
    %1 = vector.load %arg2[%c0_1, %c0_2] : memref<16x128xf32, #tpu.memory_space<vmem>>, vector<16x128xf32>
    %cst = arith.constant dense<0.000000e+00> : vector<8x128xf32>
    %2 = tpu.matmul %0, %1, %cst {dimension_numbers = #tpu.dot_dimension_numbers<[1], [0], [0], [1], [0, 0, 1, 1], [], []>} : vector<8x16xf32>, vector<16x128xf32>, vector<8x128xf32> -> vector<8x128xf32>
    %c0_3 = arith.constant 0 : index
    %c0_4 = arith.constant 0 : index
    %3 = vector.load %arg3[%c0_3, %c0_4] : memref<1x128xf32, #tpu.memory_space<vmem>>, vector<1x128xf32>
    %4 = vector.broadcast %3 : vector<1x128xf32> to vector<8x128xf32>
    %5 = arith.addf %2, %4 : vector<8x128xf32>
    %cst_5 = arith.constant 0.000000e+00 : f32
    %6 = vector.broadcast %cst_5 : f32 to vector<8x128xf32>
    %7 = arith.maximumf %5, %6 : vector<8x128xf32>
    %c0_6 = arith.constant 0 : index
    %c0_7 = arith.constant 0 : index
    %8 = vector.load %arg4[%c0_6, %c0_7] : memref<128x128xf32, #tpu.memory_space<vmem>>, vector<128x128xf32>
    %cst_8 = arith.constant dense<0.000000e+00> : vector<8x128xf32>
    %9 = tpu.matmul %7, %8, %cst_8 {dimension_numbers = #tpu.dot_dimension_numbers<[1], [0], [0], [1], [0, 0, 1, 1], [], []>} : vector<8x128xf32>, vector<128x128xf32>, vector<8x128xf32> -> vector<8x128xf32>
    %c0_9 = arith.constant 0 : index
    %c0_10 = arith.constant 0 : index
    %10 = vector.load %arg5[%c0_9, %c0_10] : memref<1x128xf32, #tpu.memory_space<vmem>>, vector<1x128xf32>
    %11 = vector.broadcast %10 : vector<1x128xf32> to vector<8x128xf32>
    %12 = arith.addf %9, %11 : vector<8x128xf32>
    %cst_11 = arith.constant 0.000000e+00 : f32
    %13 = vector.broadcast %cst_11 : f32 to vector<8x128xf32>
    %14 = arith.maximumf %12, %13 : vector<8x128xf32>
    %c0_12 = arith.constant 0 : index
    %c0_13 = arith.constant 0 : index
    %15 = vector.load %arg6[%c0_12, %c0_13] : memref<128x256xf32, #tpu.memory_space<vmem>>, vector<128x256xf32>
    %cst_14 = arith.constant dense<0.000000e+00> : vector<8x256xf32>
    %16 = tpu.matmul %14, %15, %cst_14 {dimension_numbers = #tpu.dot_dimension_numbers<[1], [0], [0], [1], [0, 0, 1, 1], [], []>} : vector<8x128xf32>, vector<128x256xf32>, vector<8x256xf32> -> vector<8x256xf32>
    %c0_15 = arith.constant 0 : index
    %c0_16 = arith.constant 0 : index
    %17 = vector.load %arg7[%c0_15, %c0_16] : memref<1x256xf32, #tpu.memory_space<vmem>>, vector<1x256xf32>
    %18 = vector.broadcast %17 : vector<1x256xf32> to vector<8x256xf32>
    %19 = arith.addf %16, %18 : vector<8x256xf32>
    %cst_17 = arith.constant 0.000000e+00 : f32
    %20 = vector.broadcast %cst_17 : f32 to vector<8x256xf32>
    %21 = arith.maximumf %19, %20 : vector<8x256xf32>
    %c0_18 = arith.constant 0 : index
    %c0_19 = arith.constant 0 : index
    %22 = vector.load %arg8[%c0_18, %c0_19] : memref<256x128xf32, #tpu.memory_space<vmem>>, vector<256x128xf32>
    %cst_20 = arith.constant dense<0.000000e+00> : vector<8x128xf32>
    %23 = tpu.matmul %21, %22, %cst_20 {dimension_numbers = #tpu.dot_dimension_numbers<[1], [0], [0], [1], [0, 0, 1, 1], [], []>} : vector<8x256xf32>, vector<256x128xf32>, vector<8x128xf32> -> vector<8x128xf32>
    %c0_21 = arith.constant 0 : index
    %c0_22 = arith.constant 0 : index
    %24 = vector.load %arg9[%c0_21, %c0_22] : memref<1x128xf32, #tpu.memory_space<vmem>>, vector<1x128xf32>
    %25 = vector.broadcast %24 : vector<1x128xf32> to vector<8x128xf32>
    %26 = arith.addf %23, %25 : vector<8x128xf32>
    %c0_23 = arith.constant 0 : index
    %c0_24 = arith.constant 0 : index
    %27 = vector.load %arg10[%c0_23, %c0_24] : memref<8x128xf32, #tpu.memory_space<vmem>>, vector<8x128xf32>
    tpu.vector_store %arg10[%c0_23, %c0_24], %26 {strides = array<i32>} : memref<8x128xf32, #tpu.memory_space<vmem>>, vector<8x128xf32>,
    return
  }
  func.func @transform_0(%arg0: i32) -> (i32, i32) {
    %c0_i32 = arith.constant 0 : i32
    %c0_i32_0 = arith.constant 0 : i32
    return %arg0, %c0_i32 : i32, i32
  }
  func.func @transform_1(%arg0: i32) -> (i32, i32) {
    %c0_i32 = arith.constant 0 : i32
    %c0_i32_0 = arith.constant 0 : i32
    %c0_i32_1 = arith.constant 0 : i32
    return %c0_i32, %c0_i32_0 : i32, i32
  }
  func.func @transform_2(%arg0: i32) -> (i32, i32) {
    %c0_i32 = arith.constant 0 : i32
    %c0_i32_0 = arith.constant 0 : i32
    %c0_i32_1 = arith.constant 0 : i32
    return %c0_i32, %c0_i32_0 : i32, i32
  }
  func.func @transform_3(%arg0: i32) -> (i32, i32) {
    %c0_i32 = arith.constant 0 : i32
    %c0_i32_0 = arith.constant 0 : i32
    %c0_i32_1 = arith.constant 0 : i32
    return %c0_i32, %c0_i32_0 : i32, i32
  }
  func.func @transform_4(%arg0: i32) -> (i32, i32) {
    %c0_i32 = arith.constant 0 : i32
    %c0_i32_0 = arith.constant 0 : i32
    %c0_i32_1 = arith.constant 0 : i32
    return %c0_i32, %c0_i32_0 : i32, i32
  }
  func.func @transform_5(%arg0: i32) -> (i32, i32) {
    %c0_i32 = arith.constant 0 : i32
    %c0_i32_0 = arith.constant 0 : i32
    %c0_i32_1 = arith.constant 0 : i32
    return %c0_i32, %c0_i32_0 : i32, i32
  }
  func.func @transform_6(%arg0: i32) -> (i32, i32) {
    %c0_i32 = arith.constant 0 : i32
    %c0_i32_0 = arith.constant 0 : i32
    %c0_i32_1 = arith.constant 0 : i32
    return %c0_i32, %c0_i32_0 : i32, i32
  }
  func.func @transform_7(%arg0: i32) -> (i32, i32) {
    %c0_i32 = arith.constant 0 : i32
    %c0_i32_0 = arith.constant 0 : i32
    %c0_i32_1 = arith.constant 0 : i32
    return %c0_i32, %c0_i32_0 : i32, i32
  }
  func.func @transform_8(%arg0: i32) -> (i32, i32) {
    %c0_i32 = arith.constant 0 : i32
    %c0_i32_0 = arith.constant 0 : i32
    %c0_i32_1 = arith.constant 0 : i32
    return %c0_i32, %c0_i32_0 : i32, i32
  }
  func.func @transform_9(%arg0: i32) -> (i32, i32) {
    %c0_i32 = arith.constant 0 : i32
    %c0_i32_0 = arith.constant 0 : i32
    return %arg0, %c0_i32 : i32, i32
  }
}

</mosaic_0001>

<bundles_post_ra>
// kernel: tpu_custom_call.1
= control target key start
LH: loop header
LB: loop body
LE: loop exit
PB: predicated region body
PF: predicated region fallthrough
CT: control target
= control target key end

     0   :  { %14 = vsyncpa [#allocation3], 0  ;;  %s1030_s0 = inlined_call_operand.hbm [shape: f32[8,16], index: 0, kind: input, shape index: {}]   ;;  %s1031_s1 = inlined_call_operand.hbm [shape: f32[16,128], index: 1, kind: input, shape index: {}]   ;;  %s1032_s2 = inlined_call_operand.vmem [shape: f32[1,128], index: 2, kind: input, shape index: {}]   ;;  %s1033_s3 = inlined_call_operand.hbm [shape: f32[128,128], index: 3, kind: input, shape index: {}]   ;;  %s1034_s4 = inlined_call_operand.vmem [shape: f32[1,128], index: 4, kind: input, shape index: {}]   ;;  %s1035_s5 = inlined_call_operand.hbm [shape: f32[128,256], index: 5, kind: input, shape index: {}]   ;;  %s1036_s6 = inlined_call_operand.vmem [shape: f32[1,256], index: 6, kind: input, shape index: {}]   ;;  %s1037_s7 = inlined_call_operand.hbm [shape: f32[256,128], index: 7, kind: input, shape index: {}]   ;;  %s1038_s8 = inlined_call_operand.vmem [shape: f32[1,128], index: 8, kind: input, shape index: {}]   ;;  %s1039_s9 = inlined_call_operand.hbm [shape: f32[8,128], index: 9, kind: output, shape index: {}]  }
   0x1   :  { %15 = vsyncpa [#allocation6], 0 }
   0x2   :  { %16 = vsyncpa [#allocation9], 0 }
   0x3   :  { %17 = vsyncpa [#allocation4], 0  ;;  %s867_s30 = smov [#allocation5]   ;;  %s727_s13 = scalar_lea.hbm %s1031_s1, 256 }
   0x4   :  { %s33_s10 = sshll.u32 %s867_s30, 4  ;;  %p728_p0 = scmp.ne.s32.totalorder %s1031_s1, %s727_s13  ;;  %s34_s10 = int_to_ptr.vmem [resolvable:$true] %s33_s10 }
   0x5   :  { %p731_p1 = scmp.lt.u32.totalorder %s727_s13, %s1031_s1 }
   0x7   :  { %p733_p2 = pnand %p731_p1, %p728_p0 }
   0x9   :  { %736 = shalt.err (!%p733_p2)
}
   0xa   :  { %s737_s18 = scalar_lea.vmem %s34_s10, 256  ;;  %p742_p4 = scmp.lt.s32.totalorder %s34_s10, %s34_s10 }
   0xb   :  { %p738_p3 = scmp.ne.s32.totalorder %s34_s10, %s737_s18  ;;  %p743_p5 = scmp.lt.s32.totalorder %s737_s18, %s737_s18 }
   0xd   :  { %p744_p6 = por %p743_p5, %p742_p4 }
   0xf   :  { %p745_p7 = pnand %p744_p6, %p738_p3 }
  0x11   :  { %748 = shalt.err (!%p745_p7)
}
  0x12   :  { %s868_s19 = smov 128   ;;  %s869_s20 = smov 8  }
  0x13   :  { %39 = dma.hbm_to_vmem [thread:$0]  %s1031_s1, 256, %s34_s10, [#allocation6], %s868_s19, %s868_s19, %s869_s20  }
  0x14   :  { %s870_s23 = smov [#allocation8]   ;;  %s749_s27 = scalar_lea.hbm %s1035_s5, 4096 }
  0x15   :  { %s61_s24 = sshll.u32 %s870_s23, 4  ;;  %p750_p8 = scmp.ne.s32.totalorder %s1035_s5, %s749_s27  ;;  %s62_s24 = int_to_ptr.vmem [resolvable:$true] %s61_s24 }
  0x16   :  { %p753_p9 = scmp.lt.u32.totalorder %s749_s27, %s1035_s5 }
  0x18   :  { %p755_p10 = pnand %p753_p9, %p750_p8 }
  0x1a   :  { %758 = shalt.err (!%p755_p10)
}
  0x1b   :  { %s759_s12 = scalar_lea.vmem %s62_s24, 4096  ;;  %p764_p12 = scmp.lt.s32.totalorder %s62_s24, %s62_s24 }
  0x1c   :  { %p760_p11 = scmp.ne.s32.totalorder %s62_s24, %s759_s12  ;;  %p765_p13 = scmp.lt.s32.totalorder %s759_s12, %s759_s12 }
  0x1e   :  { %p766_p0 = por %p765_p13, %p764_p12 }
  0x20   :  { %p767_p1 = pnand %p766_p0, %p760_p11 }
  0x22   :  { %770 = shalt.err (!%p767_p1)
}
  0x23   :  { %s871_s1 = smov 256   ;;  %s872_s10 = smov 16  }
  0x24   :  { %67 = dma.hbm_to_vmem [thread:$0]  %s1035_s5, 4096, %s62_s24, [#allocation9], %s871_s1, %s871_s1, %s872_s10  }
  0x25   :  { %s873_s15 = smov [#allocation2]   ;;  %s874_s17 = smov [#allocation7]  }
  0x26   :  { %s24_s16 = sshll.u32 %s873_s15, 4  ;;  %s47_s18 = sshll.u32 %s874_s17, 4  ;;  %s25_s16 = int_to_ptr.vmem [resolvable:$true] %s24_s16  ;;  %s957_s18 = int_to_ptr.vmem [resolvable:$true] %s47_s18 }
  0x27   :  { %s771_s23 = scalar_lea.hbm %s1030_s0, 128 }
  0x28   :  { %p772_p2 = scmp.ne.s32.totalorder %s1030_s0, %s771_s23  ;;  %p775_p3 = scmp.lt.u32.totalorder %s771_s23, %s1030_s0 }
  0x2a   :  { %p777_p4 = pnand %p775_p3, %p772_p2 }
  0x2c   :  { %780 = shalt.err (!%p777_p4)
}
  0x2d   :  { %s781_s5 = scalar_lea.vmem %s25_s16, 128  ;;  %p786_p6 = scmp.lt.s32.totalorder %s25_s16, %s25_s16 }
  0x2e   :  { %p782_p5 = scmp.ne.s32.totalorder %s25_s16, %s781_s5  ;;  %p787_p7 = scmp.lt.s32.totalorder %s781_s5, %s781_s5 }
  0x30   :  { %p788_p8 = por %p787_p7, %p786_p6 }
  0x32   :  { %p789_p9 = pnand %p788_p8, %p782_p5 }
  0x34   :  { %792 = shalt.err (!%p789_p9)
}
  0x35   :  { %27 = dma.hbm_to_vmem [thread:$0]  %s1030_s0, 128, %s25_s16, [#allocation3]  }
  0x36   :  { %s793_s12 = scalar_lea.hbm %s1033_s3, 2048 }
  0x37   :  { %p794_p10 = scmp.ne.s32.totalorder %s1033_s3, %s793_s12  ;;  %p797_p11 = scmp.lt.u32.totalorder %s793_s12, %s1033_s3 }
  0x39   :  { %p799_p12 = pnand %p797_p11, %p794_p10 }
  0x3b   :  { %802 = shalt.err (!%p799_p12)
}
  0x3c   :  { %s803_s15 = scalar_lea.vmem %s957_s18, 2048  ;;  %p808_p0 = scmp.lt.s32.totalorder %s957_s18, %s957_s18 }
  0x3d   :  { %p804_p13 = scmp.ne.s32.totalorder %s957_s18, %s803_s15  ;;  %p809_p1 = scmp.lt.s32.totalorder %s803_s15, %s803_s15 }
  0x3f   :  { %p810_p2 = por %p809_p1, %p808_p0 }
  0x41   :  { %p811_p3 = pnand %p810_p2, %p804_p13 }
  0x43   :  { %814 = shalt.err (!%p811_p3)
}
  0x44   :  { %53 = dma.hbm_to_vmem [thread:$0]  %s1033_s3, 2048, %s957_s18, [#allocation6], %s868_s19, %s868_s19, %s869_s20  }
  0x45   :  { %s875_s17 = smov [#allocation10]   ;;  %s815_s25 = scalar_lea.hbm %s1037_s7, 4096 }
  0x46   :  { %s75_s21 = sshll.u32 %s875_s17, 4  ;;  %p816_p4 = scmp.ne.s32.totalorder %s1037_s7, %s815_s25  ;;  %s76_s21 = int_to_ptr.vmem [resolvable:$true] %s75_s21 }
  0x47   :  { %p819_p5 = scmp.lt.u32.totalorder %s815_s25, %s1037_s7 }
  0x49   :  { %p821_p6 = pnand %p819_p5, %p816_p4 }
  0x4b   :  { %824 = shalt.err (!%p821_p6)
}
  0x4c   :  { %s825_s24 = scalar_lea.vmem %s76_s21, 4096  ;;  %p830_p8 = scmp.lt.s32.totalorder %s76_s21, %s76_s21 }
  0x4d   :  { %p826_p7 = scmp.ne.s32.totalorder %s76_s21, %s825_s24  ;;  %p831_p9 = scmp.lt.s32.totalorder %s825_s24, %s825_s24 }
  0x4f   :  { %p832_p10 = por %p831_p9, %p830_p8 }
  0x51   :  { %p833_p11 = pnand %p832_p10, %p826_p7 }
  0x53   :  { %836 = shalt.err (!%p833_p11)
}
  0x54   :  { %81 = dma.hbm_to_vmem [thread:$0]  %s1037_s7, 4096, %s76_s21, [#allocation9], %s868_s19, %s868_s19, %s869_s20  }
  0x55   :  { %859 = dma.done.wait [#allocation3], 128  }
  0x56   :  { %860 = vsyncadd [#allocation3], 4294967168 }
  0x57   :  { %861 = dma.done.wait [#allocation6], 2304  }
  0x58   :  { %862 = vsyncadd [#allocation6], 4294964992 }
  0x59   :  { %863 = dma.done.wait [#allocation9], 8192  }
  0x5a   :  { %864 = vsyncadd [#allocation9], 4294959104  ;;  %v876_v0 = vmov 0.0|0.0   ;;  %vm877_vm0 = vmmov 0   ;;  %v878_v1 = vmov 0.0   ;;  %v100_v2 = vld [vmem:[#allocation5] sm:$0xff] }
  0x5b   :  { %623 = vmatprep.subr.bf16.mxu0 %v876_v0  ;;  %585 = vmatprep.mubr.msk.f32.mxu0 %vm877_vm0, %v878_v1  ;;  %v101_v3 = vld [vmem:[#allocation5 + $0x8] sm:$0xff]  ;;  %v184_v5 = vld [vmem:[#allocation7] sm:$0xff]  ;;  %v185_v6 = vld [vmem:[#allocation7 + $0x8] sm:$0xff]  ;;  %vm109_vm1 = vcmask 130048   ;;  %s879_s12 = smov [#allocation11]  }
  0x5c   :  { %626 = vmatprep.subr.bf16.mxu1 %v876_v0  ;;  %620 = vmatprep.mubr.msk.f32.mxu1 %vm877_vm0, %v878_v1  ;;  %v624_v4 = vpack.c.bf16 %v101_v3, %v100_v2  ;;  %v186_v7 = vld [vmem:[#allocation7 + $0x10] sm:$0xff]  ;;  %v627_v8 = vpack.c.bf16 %v185_v6, %v184_v5  ;;  %v187_v9 = vld [vmem:[#allocation7 + $0x18] sm:$0xff]  ;;  %v99_v10 = vld [vmem:[#allocation2] sm:$0xff]  ;;  %s511_s1 = sshll.u32 %s879_s12, 4  ;;  %s512_s1 = int_to_ptr.vmem [resolvable:$true] %s511_s1 }
  0x5d   :  { %v630_v11 = vpack.c.bf16 %v187_v9, %v186_v7  ;;  %v188_v12 = vld [vmem:[#allocation7 + $0x20] sm:$0xff]  ;;  %v189_v13 = vld [vmem:[#allocation7 + $0x28] sm:$0xff]  ;;  %v190_v15 = vld [vmem:[#allocation7 + $0x30] sm:$0xff]  ;;  %p842_p13 = scmp.lt.s32.totalorder %s512_s1, %s512_s1 }
  0x5e   :  { %625 = vmatpush3.bf16.msra.mxu0 %v624_v4  ;;  %628 = vmatpush3.bf16.msra.mxu1 %v627_v8  ;;  %v633_v14 = vpack.c.bf16 %v189_v13, %v188_v12  ;;  %v191_v16 = vld [vmem:[#allocation7 + $0x38] sm:$0xff]  ;;  %v192_v18 = vld [vmem:[#allocation7 + $0x40] sm:$0xff]  ;;  %v193_v19 = vld [vmem:[#allocation7 + $0x48] sm:$0xff] }
  0x5f   :  { %629 = vmatprep.subr.bf16.mxu1 %v876_v0  ;;  %v636_v17 = vpack.c.bf16 %v191_v16, %v190_v15  ;;  %v639_v20 = vpack.c.bf16 %v193_v19, %v192_v18  ;;  %v194_v21 = vld [vmem:[#allocation7 + $0x50] sm:$0xff]  ;;  %v195_v22 = vld [vmem:[#allocation7 + $0x58] sm:$0xff]  ;;  %v196_v24 = vld [vmem:[#allocation7 + $0x60] sm:$0xff] }
  0x60   :  { %v642_v23 = vpack.c.bf16 %v195_v22, %v194_v21  ;;  %v197_v25 = vld [vmem:[#allocation7 + $0x68] sm:$0xff]  ;;  %v198_v27 = vld [vmem:[#allocation7 + $0x70] sm:$0xff]  ;;  %v199_v28 = vld [vmem:[#allocation7 + $0x78] sm:$0xff] }
  0x61   :  { %586 = vmatmul.mubr.msk.f32.vlgmr.msra.gmra.mrb[0].mxu0 %vm109_vm1, %v99_v10  ;;  %v645_v26 = vpack.c.bf16 %v197_v25, %v196_v24  ;;  %v648_v29 = vpack.c.bf16 %v199_v28, %v198_v27  ;;  %v279_v30 = vld [vmem:[#allocation8 + $0x8] sm:$0xff]  ;;  %v281_v31 = vld [vmem:[#allocation8 + $0x18] sm:$0xff]  ;;  %v278_v32 = vld [vmem:[#allocation8] sm:$0xff] }
  0x62   :  { %386 = vmatprep.mubr.f32.mxu0 %v878_v1  ;;  %631 = vmatpush3.bf16.msra.mxu1 %v630_v11  ;;  %v650_v33 = vpack.c.bf16 %v281_v31, %v279_v30  ;;  %v280_v34 = vld [vmem:[#allocation8 + $0x10] sm:$0xff]  ;;  %v283_v35 = vld [vmem:[#allocation8 + $0x28] sm:$0xff]  ;;  %v285_v36 = vld [vmem:[#allocation8 + $0x38] sm:$0xff] }
  0x63   :  { %632 = vmatprep.subr.bf16.mxu1 %v876_v0  ;;  %v652_v37 = vpack.c.bf16 %v280_v34, %v278_v32  ;;  %v654_v38 = vpack.c.bf16 %v285_v36, %v283_v35  ;;  %v282_v39 = vld [vmem:[#allocation8 + $0x20] sm:$0xff]  ;;  %v284_v40 = vld [vmem:[#allocation8 + $0x30] sm:$0xff]  ;;  %v287_v41 = vld [vmem:[#allocation8 + $0x48] sm:$0xff] }
  0x64   :  { %651 = vmatprep.subr.bf16.mxu0 %v650_v33  ;;  %v289_v42 = vld [vmem:[#allocation8 + $0x58] sm:$0xff]  ;;  %v656_v43 = vpack.c.bf16 %v284_v40, %v282_v39  ;;  %v286_v45 = vld [vmem:[#allocation8 + $0x40] sm:$0xff]  ;;  %v288_v46 = vld [vmem:[#allocation8 + $0x50] sm:$0xff] }
  0x65   :  { %653 = vmatpush1.bf16.msra.mxu0 %v652_v37  ;;  %v658_v44 = vpack.c.bf16 %v289_v42, %v287_v41  ;;  %v291_v47 = vld [vmem:[#allocation8 + $0x68] sm:$0xff]  ;;  %v293_v48 = vld [vmem:[#allocation8 + $0x78] sm:$0xff]  ;;  %v660_v49 = vpack.c.bf16 %v288_v46, %v286_v45  ;;  %v290_v51 = vld [vmem:[#allocation8 + $0x60] sm:$0xff] }
  0x66   :  { %634 = vmatpush3.bf16.msra.mxu1 %v633_v14  ;;  %655 = vmatprep.subr.bf16.mxu0 %v654_v38  ;;  %v662_v50 = vpack.c.bf16 %v293_v48, %v291_v47  ;;  %v292_v52 = vld [vmem:[#allocation8 + $0x70] sm:$0xff]  ;;  %v295_v53 = vld [vmem:[#allocation8 + $0x88] sm:$0xff]  ;;  %v297_v54 = vld [vmem:[#allocation8 + $0x98] sm:$0xff] }
  0x67   :  { %635 = vmatprep.subr.bf16.mxu1 %v876_v0  ;;  %v664_v55 = vpack.c.bf16 %v292_v52, %v290_v51  ;;  %v666_v56 = vpack.c.bf16 %v297_v54, %v295_v53  ;;  %v294_v57 = vld [vmem:[#allocation8 + $0x80] sm:$0xff]  ;;  %v296_v58 = vld [vmem:[#allocation8 + $0x90] sm:$0xff]  ;;  %v299_v59 = vld [vmem:[#allocation8 + $0xa8] sm:$0xff] }
  0x68   :  { %v301_v60 = vld [vmem:[#allocation8 + $0xb8] sm:$0xff]  ;;  %v668_v61 = vpack.c.bf16 %v296_v58, %v294_v57  ;;  %v298_v63 = vld [vmem:[#allocation8 + $0xa0] sm:$0xff]  ;;  %v303_v1 = vld [vmem:[#allocation8 + $0xc8] sm:$0xff] }
  0x69   :  { %657 = vmatpush1.bf16.msra.mxu0 %v656_v43  ;;  %v670_v62 = vpack.c.bf16 %v301_v60, %v299_v59  ;;  %v305_v2 = vld [vmem:[#allocation8 + $0xd8] sm:$0xff]  ;;  %v302_v5 = vld [vmem:[#allocation8 + $0xc0] sm:$0xff]  ;;  %v304_v6 = vld [vmem:[#allocation8 + $0xd0] sm:$0xff] }
  0x6a   :  { %637 = vmatpush3.bf16.msra.mxu1 %v636_v17  ;;  %659 = vmatprep.subr.bf16.mxu0 %v658_v44  ;;  %v674_v4 = vpack.c.bf16 %v305_v2, %v303_v1  ;;  %v676_v7 = vpack.c.bf16 %v304_v6, %v302_v5  ;;  %v522_v8 = vld [vmem:[%s1032_s2] ss:$0 sm:$0xff]  ;;  %v309_v14 = vld [vmem:[#allocation8 + $0xf8] sm:$0xff]  ;;  %v306_v16 = vld [vmem:[#allocation8 + $0xe0] sm:$0xff] }
  0x6b   :  { %638 = vmatprep.subr.bf16.mxu1 %v876_v0  ;;  %v307_v13 = vld [vmem:[#allocation8 + $0xe8] sm:$0xff]  ;;  %v308_v17 = vld [vmem:[#allocation8 + $0xf0] sm:$0xff]  ;;  %v411_v19 = vld [vmem:[#allocation10 + $0x80] sm:$0xff] }
  0x6c   :  { %v678_v15 = vpack.c.bf16 %v309_v14, %v307_v13  ;;  %v680_v18 = vpack.c.bf16 %v308_v17, %v306_v16  ;;  %v395_v21 = vld [vmem:[#allocation10] sm:$0xff]  ;;  %v413_v24 = vld [vmem:[#allocation10 + $0x90] sm:$0xff]  ;;  %v414_v25 = vld [vmem:[#allocation10 + $0x98] sm:$0xff] }
  0x6d   :  { %661 = vmatpush1.bf16.msra.mxu0 %v660_v49  ;;  %v686_v27 = vpack.c.bf16 %v414_v25, %v413_v24  ;;  %v397_v28 = vld [vmem:[#allocation10 + $0x10] sm:$0xff]  ;;  %v415_v30 = vld [vmem:[#allocation10 + $0xa0] sm:$0xff]  ;;  %v416_v31 = vld [vmem:[#allocation10 + $0xa8] sm:$0xff] }
  0x6e   :  { %640 = vmatpush3.bf16.msra.mxu1 %v639_v20  ;;  %663 = vmatprep.subr.bf16.mxu0 %v662_v50  ;;  %v412_v20 = vld [vmem:[#allocation10 + $0x88] sm:$0xff]  ;;  %v690_v33 = vpack.c.bf16 %v416_v31, %v415_v30  ;;  %v399_v34 = vld [vmem:[#allocation10 + $0x20] sm:$0xff]  ;;  %v417_v36 = vld [vmem:[#allocation10 + $0xb0] sm:$0xff] }
  0x6f   :  { %641 = vmatprep.subr.bf16.mxu1 %v876_v0  ;;  %v682_v22 = vpack.c.bf16 %v412_v20, %v411_v19  ;;  %v400_v35 = vld [vmem:[#allocation10 + $0x28] sm:$0xff]  ;;  %v418_v37 = vld [vmem:[#allocation10 + $0xb8] sm:$0xff]  ;;  %v401_v40 = vld [vmem:[#allocation10 + $0x30] sm:$0xff] }
  0x70   :  { %v692_v38 = vpack.c.bf16 %v400_v35, %v399_v34  ;;  %v694_v39 = vpack.c.bf16 %v418_v37, %v417_v36  ;;  %v402_v41 = vld [vmem:[#allocation10 + $0x38] sm:$0xff]  ;;  %v419_v42 = vld [vmem:[#allocation10 + $0xc0] sm:$0xff]  ;;  %v420_v43 = vld [vmem:[#allocation10 + $0xc8] sm:$0xff] }
  0x71   :  { %665 = vmatpush1.bf16.msra.mxu0 %v664_v55  ;;  %v696_v44 = vpack.c.bf16 %v402_v41, %v401_v40  ;;  %v698_v45 = vpack.c.bf16 %v420_v43, %v419_v42  ;;  %v403_v46 = vld [vmem:[#allocation10 + $0x40] sm:$0xff]  ;;  %v404_v47 = vld [vmem:[#allocation10 + $0x48] sm:$0xff]  ;;  %v421_v48 = vld [vmem:[#allocation10 + $0xd0] sm:$0xff] }
  0x72   :  { %643 = vmatpush3.bf16.msra.mxu1 %v642_v23  ;;  %667 = vmatprep.subr.bf16.mxu0 %v666_v56  ;;  %v396_v23 = vld [vmem:[#allocation10 + $0x8] sm:$0xff]  ;;  %v422_v49 = vld [vmem:[#allocation10 + $0xd8] sm:$0xff]  ;;  %v700_v50 = vpack.c.bf16 %v404_v47, %v403_v46  ;;  %v405_v52 = vld [vmem:[#allocation10 + $0x50] sm:$0xff] }
  0x73   :  { %644 = vmatprep.subr.bf16.mxu1 %v876_v0  ;;  %v702_v51 = vpack.c.bf16 %v422_v49, %v421_v48  ;;  %v406_v53 = vld [vmem:[#allocation10 + $0x58] sm:$0xff]  ;;  %v423_v54 = vld [vmem:[#allocation10 + $0xe0] sm:$0xff]  ;;  %v424_v55 = vld [vmem:[#allocation10 + $0xe8] sm:$0xff] }
  0x74   :  { %v704_v56 = vpack.c.bf16 %v406_v53, %v405_v52  ;;  %v706_v57 = vpack.c.bf16 %v424_v55, %v423_v54  ;;  %v524_v58 = vld [vmem:[%s1034_s4] ss:$0 sm:$0xff]  ;;  %v425_v2 = vld [vmem:[#allocation10 + $0xf0] sm:$0xff]  ;;  %v410_v6 = vld [vmem:[#allocation10 + $0x78] sm:$0xff] }
  0x75   :  { %669 = vmatpush1.bf16.msra.mxu0 %v668_v61  ;;  %v409_v5 = vld [vmem:[#allocation10 + $0x70] sm:$0xff] }
  0x76   :  { %646 = vmatpush3.bf16.msra.mxu1 %v645_v26  ;;  %671 = vmatprep.subr.bf16.mxu0 %v670_v62  ;;  %v684_v26 = vpack.c.bf16 %v396_v23, %v395_v21 }
  0x77   :  { %647 = vmatprep.subr.bf16.mxu1 %v876_v0  ;;  %v300_v0 = vld [vmem:[#allocation8 + $0xb0] sm:$0xff] }
  0x78   :  { %v672_v3 = vpack.c.bf16 %v300_v0, %v298_v63  ;;  %v407_v63 = vld [vmem:[#allocation10 + $0x60] sm:$0xff]  ;;  %v408_v0 = vld [vmem:[#allocation10 + $0x68] sm:$0xff] }
  0x79   :  { %v708_v1 = vpack.c.bf16 %v408_v0, %v407_v63 }
  0x7a   :  { %649 = vmatpush3.bf16.msra.mxu1 %v648_v29  ;;  %673 = vmatpush1.bf16.msra.mxu0 %v672_v3  ;;  %v398_v29 = vld [vmem:[#allocation10 + $0x18] sm:$0xff] }
  0x7b   :  { %675 = vmatprep.subr.bf16.mxu0 %v674_v4  ;;  %683 = vmatprep.subr.bf16.mxu1 %v682_v22  ;;  %v688_v32 = vpack.c.bf16 %v398_v29, %v397_v28  ;;  %v426_v3 = vld [vmem:[#allocation10 + $0xf8] sm:$0xff]  ;;  %v525_v22 = vld [vmem:[%s1038_s8] ss:$0 sm:$0xff] }
  0x7c   :  { %v710_v4 = vpack.c.bf16 %v426_v3, %v425_v2 }
  0x7e   :  { %677 = vmatpush1.bf16.msra.mxu0 %v676_v7  ;;  %v712_v7 = vpack.c.bf16 %v410_v6, %v409_v5 }
  0x7f   :  { %679 = vmatprep.subr.bf16.mxu0 %v678_v15 }
  0x82   :  { %681 = vmatpush1.bf16.msra.mxu0 %v680_v18 }
 0x134   :  { %v179_v9 = vpop.f32.mrb[0].mxu0 }
 0x135   :  { %v180_v10 = vadd.f32 %v522_v8, %v179_v9  ;;  %v587_v11 = vpop.f32.mrb[1].mxu0  ;;  %v312_v8 = vlaneseq }
 0x136   :  { %v310_v11 = vld [vmem:[%s1036_s6] sm:$0x3]  ;;  %s837_s6 = scalar_lea.vmem %s512_s1, 128 }
 0x137   :  { %v183_v12 = vmax.f32 %v180_v10, 0.0  ;;  %v313_v9 = vshrl.u32 %v312_v8, 7  ;;  %p838_p12 = scmp.ne.s32.totalorder %s512_s1, %s837_s6  ;;  %p843_p0 = scmp.lt.s32.totalorder %s837_s6, %s837_s6 }
 0x139   :  { %621 = vmatmul.mubr.f32.vlgmr.msra.gmra.mrb[0].mxu1 %v183_v12  ;;  %v314_v10 = vsub.s32 0, %v313_v9  ;;  %v318_v12 = vsub.s32 1, %v313_v9  ;;  %p844_p1 = por %p843_p0, %p842_p13 }
 0x13a   :  { %685 = vmatpush3.bf16.msra.mxu1 %v684_v26 }
 0x13b   :  { %687 = vmatprep.subr.bf16.mxu1 %v686_v27  ;;  %v315_v13 = vrot.slane %v310_v11, %v314_v10  ;;  %v319_v14 = vrot.slane %v310_v11, %v318_v12  ;;  %p845_p2 = pnand %p844_p1, %p838_p12 }
 0x13e   :  { %689 = vmatpush3.bf16.msra.mxu1 %v688_v32 }
 0x13f   :  { %691 = vmatprep.subr.bf16.mxu1 %v690_v33 }
 0x142   :  { %693 = vmatpush3.bf16.msra.mxu1 %v692_v38 }
 0x143   :  { %695 = vmatprep.subr.bf16.mxu1 %v694_v39 }
 0x146   :  { %697 = vmatpush3.bf16.msra.mxu1 %v696_v44 }
 0x147   :  { %699 = vmatprep.subr.bf16.mxu1 %v698_v45 }
 0x14a   :  { %701 = vmatpush3.bf16.msra.mxu1 %v700_v50 }
 0x14b   :  { %703 = vmatprep.subr.bf16.mxu1 %v702_v51 }
 0x14e   :  { %705 = vmatpush3.bf16.msra.mxu1 %v704_v56 }
 0x14f   :  { %707 = vmatprep.subr.bf16.mxu1 %v706_v57 }
 0x152   :  { %709 = vmatpush3.bf16.msra.mxu1 %v708_v1 }
 0x153   :  { %711 = vmatprep.subr.bf16.mxu1 %v710_v4 }
 0x156   :  { %713 = vmatpush3.bf16.msra.mxu1 %v712_v7 }
 0x20c   :  { %v273_v59 = vpop.f32.mrb[0].mxu1 }
 0x20d   :  { %v274_v60 = vadd.f32 %v524_v58, %v273_v59  ;;  %v622_v61 = vpop.f32.mrb[1].mxu1 }
 0x20f   :  { %v277_v62 = vmax.f32 %v274_v60, 0.0 }
 0x211   :  { %387 = vmatmul.mubr.f32.vlgmr.msra.gmra.mrb[2].mxu0 %v277_v62 }
 0x2e4   :  { %v388_v15 = vpop.f32.mrb[2].mxu0 }
 0x2e5   :  { %v389_v16 = vadd.f32 %v388_v15, %v315_v13  ;;  %v390_v17 = vpop.f32.mrb[3].mxu0 }
 0x2e6   :  { %v391_v18 = vadd.f32 %v390_v17, %v319_v14 }
 0x2e7   :  { %v393_v20 = vmax.f32 %v389_v16, 0.0 }
 0x2e8   :  { %v394_v19 = vmax.f32 %v391_v18, 0.0 }
 0x2ea   :  { %498 = vmatprep.mubr.f32.mxu1 %v394_v19 }
 0x2eb   :  { %499 = vmatmul.mubr.f32.vlgmr.msra.gmra.mrb[2].mxu1 %v393_v20 }
 0x3be   :  { %v578_v21 = vpop.f32.mrb[2].mxu1 }
 0x3bf   :  { %v579_v23 = vpop.f32.mrb[3].mxu1 }
 0x3c0   :  { %v580_v24 = vadd.f32 %v579_v23, %v578_v21 }
 0x3c2   :  { %v501_v25 = vadd.f32 %v580_v24, %v525_v22 }
 0x3c4   :  { %504 = vst [vmem:[#allocation11] sm:$0xff] %v501_v25 }
 0x3c5   :  { %848 = shalt.err (!%p845_p2)
}
 0x3c6   :  { %s849_s14 = scalar_lea.hbm %s1039_s9, 128 }
 0x3c7   :  { %p850_p3 = scmp.ne.s32.totalorder %s1039_s9, %s849_s14  ;;  %p853_p4 = scmp.lt.u32.totalorder %s849_s14, %s1039_s9 }
 0x3c9   :  { %p855_p5 = pnand %p853_p4, %p850_p3 }
 0x3cb   :  { %858 = shalt.err (!%p855_p5)
}
 0x3cc   :  { %514 = dma.vmem_to_hbm [thread:$0]  %s512_s1, 128, %s1039_s9, [#allocation4]  }
 0x3cd   :  { %865 = dma.done.wait [#allocation4], 128  }
 0x3ce   :  { %866 = vsyncadd [#allocation4], 4294967168 }
 0x3cf   :  { %518 = vsyncpa [#allocation3], 1 }
 0x3d0   :  { %519 = vsyncpa [#allocation6], 1 }
 0x3d1   :  { %520 = vsyncpa [#allocation9], 1 }
 0x3d2   :  { %521 = vsyncpa [#allocation4], 1 }

</bundles_post_ra>
